<compile_context>
chip_gen: v7x
topology: tpu7x:2x2x1
jax: 0.10.0
libtpu: 0.0.40
codegen_flags: <defaults>
</compile_context>

<pallas_src>
import functools

import jax
import jax.numpy as jnp
from jax import lax
from jax.experimental import pallas as pl
from jax.experimental.pallas import tpu as pltpu


def _fusion_kernel(inflow_ref, outflow_ref, emb_ref, w_ref, tile_ref,
                   oin_ref, oout_ref, *, E_in):
    """One grid step: a block of Bt batches.

    inflow_ref/outflow_ref: (Bt, C, HWp)   flattened, lane-dense flows
    emb_ref:                (Bt, W, K)     fused [day | week | 1] embeddings
    w_ref:                  (2*E_in, K)    packed conv weights + bias column
    tile_ref:               (W, HWp)       0/1 repeat-over-H matrix
    oin_ref/oout_ref:       (Bt, C_out, HWp)
    """
    Bt = inflow_ref.shape[0]
    nt = (((1,), (1,)), ((), ()))          # contract last dim of both (NT matmul)

    w = w_ref[...]                          # loaded once per step
    tile = tile_ref[...]

    for b in range(Bt):                     # Bt is small and static (<= 16)
        # One fused matmul == all four 1x1 convs + biases for this batch:
        #   y[e, w'] = sum_k w_all[e, k] * emb_all[b, w', k]
        y = lax.dot_general(w, emb_ref[b], nt,
                            preferred_element_type=jnp.float32)      # (2*E_in, W)
        # Repeat over H via the 0/1 tiling matmul -> lane-dense (2*E_in, H*W).
        y_t = jnp.dot(y, tile, preferred_element_type=jnp.float32)
        y_t = y_t.astype(oin_ref.dtype)                              # single cast
        # torch.cat([flow, day, week], dim=1): one sublane concat + one
        # full-width, unmasked store per output ref.
        oin_ref[b] = jnp.concatenate([inflow_ref[b], y_t[:E_in]], axis=0)
        oout_ref[b] = jnp.concatenate([outflow_ref[b], y_t[E_in:]], axis=0)


def _pick_batch_block(B, bytes_per_batch, target_bytes=512 * 1024, cap=16):
    """Largest divisor of B that keeps per-step output traffic near the target."""
    want = max(1, min(B, cap, -(-target_bytes // max(bytes_per_batch, 1))))
    for bt in range(int(want), 0, -1):
        if B % bt == 0:
            return bt
    return 1


def time_period_fusion_block(inflow, outflow, embed_in_day, embed_in_week,
                             params, *, batch_block=None):
    """inflow/outflow: (B, C, H, W); embed_in_day: (B, W, S); embed_in_week: (B, W, Dw)."""
    B, C, H, W = inflow.shape
    S = embed_in_day.shape[2]
    Dw = embed_in_week.shape[2]
    E_day = params["w_day_in"].shape[0]
    E_week = params["w_week_in"].shape[0]
    E_in = E_day + E_week
    E_tot = 2 * E_in
    C_out = C + E_in
    HW = H * W
    HWp = ((HW + 127) // 128) * 128        # keep output stores lane-dense
    K = S + Dw + 1
    f32 = jnp.float32

    # Lane-dense flattening of the contiguous NCHW spatial plane (free reshape),
    # padded up to a multiple of 128 lanes for general H, W.
    inflow_f = inflow.reshape(B, C, HW)
    outflow_f = outflow.reshape(B, C, HW)
    if HWp != HW:
        pad = ((0, 0), (0, 0), (0, HWp - HW))
        inflow_f = jnp.pad(inflow_f, pad)
        outflow_f = jnp.pad(outflow_f, pad)

    # Single fused embedding operand: [day | week | 1] along the channel axis.
    emb_all = jnp.concatenate(
        [embed_in_day.astype(f32),
         embed_in_week.astype(f32),
         jnp.ones((B, W, 1), f32)], axis=2)                          # (B, W, K)

    # Packed weights, rows ordered [day_in; week_in; day_out; week_out] so the
    # "*_in" / "*_out" halves are contiguous, sublane-aligned slices of the
    # matmul result.  Block-diagonal zeros + bias column make ONE NT dot
    # against emb_all equal to all four convs + biases.
    def day_rows(wd, bd):
        return jnp.concatenate(
            [wd.astype(f32), jnp.zeros((wd.shape[0], Dw), f32),
             bd.astype(f32)[:, None]], axis=1)

    def week_rows(ww, bw):
        return jnp.concatenate(
            [jnp.zeros((ww.shape[0], S), f32), ww.astype(f32),
             bw.astype(f32)[:, None]], axis=1)

    w_all = jnp.concatenate(
        [day_rows(params["w_day_in"], params["b_day_in"]),
         week_rows(params["w_week_in"], params["b_week_in"]),
         day_rows(params["w_day_out"], params["b_day_out"]),
         week_rows(params["w_week_out"], params["b_week_out"])],
        axis=0)                                                      # (E_tot, K)

    # Loop-invariant repeat-over-H matrix, hoisted out of the kernel body:
    # tile[w', h*W + w''] = (w' == w''), exact 0/1 in f32 (no rounding).
    col = lax.broadcasted_iota(jnp.int32, (W, HWp), 1)
    row = lax.broadcasted_iota(jnp.int32, (W, HWp), 0)
    tile_mat = ((col % W) == row).astype(f32)                        # (W, HWp)

    # Batch blocking: aim for ~0.5 MB of output per grid step (per-step fixed
    # overhead dominates at these sizes).  For tiny B this collapses to one step.
    # TODO(synk): on v7x with large B, raise the cap (~32) while keeping >= 2
    # grid steps so both TensorCores get work.
    bytes_per_batch = 2 * C_out * HWp * inflow.dtype.itemsize
    Bt = batch_block if batch_block is not None else _pick_batch_block(B, bytes_per_batch)
    assert B % Bt == 0, "batch_block must divide the batch size"
    grid = (B // Bt,)

    kernel = functools.partial(_fusion_kernel, E_in=E_in)

    flow_spec = pl.BlockSpec((Bt, C, HWp), lambda i: (i, 0, 0))
    out_spec = pl.BlockSpec((Bt, C_out, HWp), lambda i: (i, 0, 0))

    out_in, out_out = pl.pallas_call(
        kernel,
        out_shape=(
            jax.ShapeDtypeStruct((B, C_out, HWp), inflow.dtype),
            jax.ShapeDtypeStruct((B, C_out, HWp), outflow.dtype),
        ),
        grid=grid,
        in_specs=[
            flow_spec,                                        # inflow  (B, C, HWp)
            flow_spec,                                        # outflow (B, C, HWp)
            pl.BlockSpec((Bt, W, K), lambda i: (i, 0, 0)),    # fused embeddings
            pl.BlockSpec((E_tot, K), lambda i: (0, 0)),       # packed weights+bias (resident)
            pl.BlockSpec((W, HWp), lambda i: (0, 0)),         # repeat-over-H matrix (resident)
        ],
        out_specs=(out_spec, out_spec),
        compiler_params=pltpu.CompilerParams(
            dimension_semantics=("parallel",)),
    )(inflow_f, outflow_f, emb_all, w_all, tile_mat)

    out_in = out_in[:, :, :HW].reshape(B, C_out, H, W)
    out_out = out_out[:, :, :HW].reshape(B, C_out, H, W)
    return out_in, out_out


def _reference(inflow, outflow, embed_in_day, embed_in_week, params):
    """Pure-JAX reference matching the PyTorch forward (NCHW)."""
    B, C, H, W = inflow.shape

    def conv1x1(embed, w, b):  # embed: (B, W, S), w: (E, S), b: (E,)
        y = jnp.einsum("bws,es->bew", embed, w) + b[None, :, None]   # (B, E, W)
        return jnp.broadcast_to(y[:, :, None, :], (B, w.shape[0], H, W))

    d_in = conv1x1(embed_in_day, params["w_day_in"], params["b_day_in"])
    d_out = conv1x1(embed_in_day, params["w_day_out"], params["b_day_out"])
    w_in = conv1x1(embed_in_week, params["w_week_in"], params["b_week_in"])
    w_out = conv1x1(embed_in_week, params["w_week_out"], params["b_week_out"])
    return (jnp.concatenate([inflow, d_in, w_in], axis=1),
            jnp.concatenate([outflow, d_out, w_out], axis=1))


if __name__ == "__main__":
    # Module hyperparameters.
    slices_in_day = 48
    days_in_week = 7
    embed_len_in_day = 8
    embed_len_in_week = 8

    # Small example shapes implied by the forward pass.
    B, C, H, W = 2, 4, 16, 16

    key = jax.random.PRNGKey(0)
    keys = jax.random.split(key, 12)

    inflow = jax.random.normal(keys[0], (B, C, H, W), jnp.float32)
    outflow = jax.random.normal(keys[1], (B, C, H, W), jnp.float32)
    embed_in_day = jax.random.normal(keys[2], (B, W, slices_in_day), jnp.float32)
    embed_in_week = jax.random.normal(keys[3], (B, W, days_in_week), jnp.float32)

    def uinit(k, shape, fan_in):
        bound = 1.0 / jnp.sqrt(fan_in)
        return jax.random.uniform(k, shape, jnp.float32, -bound, bound)

    # 1x1 conv weights stored as (out_channels, in_channels); biases (out_channels,).
    params = {
        "w_day_in": uinit(keys[4], (embed_len_in_day, slices_in_day), slices_in_day),
        "b_day_in": uinit(keys[5], (embed_len_in_day,), slices_in_day),
        "w_day_out": uinit(keys[6], (embed_len_in_day, slices_in_day), slices_in_day),
        "b_day_out": uinit(keys[7], (embed_len_in_day,), slices_in_day),
        "w_week_in": uinit(keys[8], (embed_len_in_week, days_in_week), days_in_week),
        "b_week_in": uinit(keys[9], (embed_len_in_week,), days_in_week),
        "w_week_out": uinit(keys[10], (embed_len_in_week, days_in_week), days_in_week),
        "b_week_out": uinit(keys[11], (embed_len_in_week,), days_in_week),
    }

    out_in, out_out = time_period_fusion_block(
        inflow, outflow, embed_in_day, embed_in_week, params)
    jax.block_until_ready((out_in, out_out))

    ref_in, ref_out = _reference(inflow, outflow, embed_in_day, embed_in_week, params)
    assert out_in.shape == (B, C + embed_len_in_day + embed_len_in_week, H, W)
    assert out_out.shape == out_in.shape
    assert jnp.allclose(out_in, ref_in, atol=1e-5, rtol=1e-5)
    assert jnp.allclose(out_out, ref_out, atol=1e-5, rtol=1e-5)

    print("KERNEL_OK")
</pallas_src>

<mosaic_0001>
module attributes {stable_mosaic.version = 11 : i64} {
  func.func @_fusion_kernel(%arg0: i32, %arg1: memref<2x4x256xf32, #tpu.memory_space<vmem>>, %arg2: memref<2x4x256xf32, #tpu.memory_space<vmem>>, %arg3: memref<2x16x56xf32, #tpu.memory_space<vmem>>, %arg4: memref<32x56xf32, #tpu.memory_space<vmem>>, %arg5: memref<16x256xf32, #tpu.memory_space<vmem>>, %arg6: memref<2x20x256xf32, #tpu.memory_space<vmem>>, %arg7: memref<2x20x256xf32, #tpu.memory_space<vmem>>) attributes {dimension_semantics = [#tpu.dimension_semantics<parallel>], iteration_bounds = array<i64: 1>, scalar_prefetch = 0 : i64, scratch_operands = 0 : i64, tpu.core_type = #tpu.core_type<tc>, window_params = [{transform_indices = @transform_0, window_bounds = array<i64: 2, 4, 256>}, {transform_indices = @transform_1, window_bounds = array<i64: 2, 4, 256>}, {transform_indices = @transform_2, window_bounds = array<i64: 2, 16, 56>}, {pipeline_mode = #tpu.pipeline_mode<synchronous>, transform_indices = @transform_3, window_bounds = array<i64: 32, 56>}, {pipeline_mode = #tpu.pipeline_mode<synchronous>, transform_indices = @transform_4, window_bounds = array<i64: 16, 256>}, {transform_indices = @transform_5, window_bounds = array<i64: 2, 20, 256>}, {transform_indices = @transform_6, window_bounds = array<i64: 2, 20, 256>}]} {
    %c0 = arith.constant 0 : index
    %c0_0 = arith.constant 0 : index
    %0 = vector.load %arg4[%c0, %c0_0] : memref<32x56xf32, #tpu.memory_space<vmem>>, vector<32x56xf32>
    %c0_1 = arith.constant 0 : index
    %c0_2 = arith.constant 0 : index
    %1 = vector.load %arg5[%c0_1, %c0_2] : memref<16x256xf32, #tpu.memory_space<vmem>>, vector<16x256xf32>
    %c0_3 = arith.constant 0 : index
    %c0_4 = arith.constant 0 : index
    %c0_5 = arith.constant 0 : index
    %2 = vector.load %arg3[%c0_3, %c0_4, %c0_5] : memref<2x16x56xf32, #tpu.memory_space<vmem>>, vector<1x16x56xf32>
    %3 = vector.shape_cast %2 : vector<1x16x56xf32> to vector<16x56xf32>
    %cst = arith.constant dense<0.000000e+00> : vector<32x16xf32>
    %4 = tpu.matmul %0, %3, %cst {dimension_numbers = #tpu.dot_dimension_numbers<[1], [1], [0], [0], [0, 0, 1, 0], [], []>} : vector<32x56xf32>, vector<16x56xf32>, vector<32x16xf32> -> vector<32x16xf32>
    %cst_6 = arith.constant dense<0.000000e+00> : vector<32x256xf32>
    %5 = tpu.matmul %4, %1, %cst_6 {dimension_numbers = #tpu.dot_dimension_numbers<[1], [0], [0], [1], [0, 0, 1, 1], [], []>} : vector<32x16xf32>, vector<16x256xf32>, vector<32x256xf32> -> vector<32x256xf32>
    %c0_7 = arith.constant 0 : index
    %c0_8 = arith.constant 0 : index
    %c0_9 = arith.constant 0 : index
    %6 = vector.load %arg1[%c0_7, %c0_8, %c0_9] : memref<2x4x256xf32, #tpu.memory_space<vmem>>, vector<1x4x256xf32>
    %7 = vector.shape_cast %6 : vector<1x4x256xf32> to vector<4x256xf32>
    %8 = vector.extract_strided_slice %5 {offsets = [0, 0], sizes = [16, 256], strides = [1, 1]} : vector<32x256xf32> to vector<16x256xf32>
    %9 = tpu.concatenate %7, %8 in 0 : vector<4x256xf32>, vector<16x256xf32> -> vector<20x256xf32>
    %c0_10 = arith.constant 0 : index
    %c0_11 = arith.constant 0 : index
    %c0_12 = arith.constant 0 : index
    %10 = vector.load %arg6[%c0_10, %c0_11, %c0_12] : memref<2x20x256xf32, #tpu.memory_space<vmem>>, vector<1x20x256xf32>
    %11 = vector.shape_cast %10 : vector<1x20x256xf32> to vector<20x256xf32>
    %12 = vector.shape_cast %9 : vector<20x256xf32> to vector<1x20x256xf32>
    tpu.vector_store %arg6[%c0_10, %c0_11, %c0_12], %12 {strides = array<i32>} : memref<2x20x256xf32, #tpu.memory_space<vmem>>, vector<1x20x256xf32>,
    %c0_13 = arith.constant 0 : index
    %c0_14 = arith.constant 0 : index
    %c0_15 = arith.constant 0 : index
    %13 = vector.load %arg2[%c0_13, %c0_14, %c0_15] : memref<2x4x256xf32, #tpu.memory_space<vmem>>, vector<1x4x256xf32>
    %14 = vector.shape_cast %13 : vector<1x4x256xf32> to vector<4x256xf32>
    %15 = vector.extract_strided_slice %5 {offsets = [16, 0], sizes = [16, 256], strides = [1, 1]} : vector<32x256xf32> to vector<16x256xf32>
    %16 = tpu.concatenate %14, %15 in 0 : vector<4x256xf32>, vector<16x256xf32> -> vector<20x256xf32>
    %c0_16 = arith.constant 0 : index
    %c0_17 = arith.constant 0 : index
    %c0_18 = arith.constant 0 : index
    %17 = vector.load %arg7[%c0_16, %c0_17, %c0_18] : memref<2x20x256xf32, #tpu.memory_space<vmem>>, vector<1x20x256xf32>
    %18 = vector.shape_cast %17 : vector<1x20x256xf32> to vector<20x256xf32>
    %19 = vector.shape_cast %16 : vector<20x256xf32> to vector<1x20x256xf32>
    tpu.vector_store %arg7[%c0_16, %c0_17, %c0_18], %19 {strides = array<i32>} : memref<2x20x256xf32, #tpu.memory_space<vmem>>, vector<1x20x256xf32>,
    %c1 = arith.constant 1 : index
    %c0_19 = arith.constant 0 : index
    %c0_20 = arith.constant 0 : index
    %20 = vector.load %arg3[%c1, %c0_19, %c0_20] : memref<2x16x56xf32, #tpu.memory_space<vmem>>, vector<1x16x56xf32>
    %21 = vector.shape_cast %20 : vector<1x16x56xf32> to vector<16x56xf32>
    %cst_21 = arith.constant dense<0.000000e+00> : vector<32x16xf32>
    %22 = tpu.matmul %0, %21, %cst_21 {dimension_numbers = #tpu.dot_dimension_numbers<[1], [1], [0], [0], [0, 0, 1, 0], [], []>} : vector<32x56xf32>, vector<16x56xf32>, vector<32x16xf32> -> vector<32x16xf32>
    %cst_22 = arith.constant dense<0.000000e+00> : vector<32x256xf32>
    %23 = tpu.matmul %22, %1, %cst_22 {dimension_numbers = #tpu.dot_dimension_numbers<[1], [0], [0], [1], [0, 0, 1, 1], [], []>} : vector<32x16xf32>, vector<16x256xf32>, vector<32x256xf32> -> vector<32x256xf32>
    %c1_23 = arith.constant 1 : index
    %c0_24 = arith.constant 0 : index
    %c0_25 = arith.constant 0 : index
    %24 = vector.load %arg1[%c1_23, %c0_24, %c0_25] : memref<2x4x256xf32, #tpu.memory_space<vmem>>, vector<1x4x256xf32>
    %25 = vector.shape_cast %24 : vector<1x4x256xf32> to vector<4x256xf32>
    %26 = vector.extract_strided_slice %23 {offsets = [0, 0], sizes = [16, 256], strides = [1, 1]} : vector<32x256xf32> to vector<16x256xf32>
    %27 = tpu.concatenate %25, %26 in 0 : vector<4x256xf32>, vector<16x256xf32> -> vector<20x256xf32>
    %c1_26 = arith.constant 1 : index
    %c0_27 = arith.constant 0 : index
    %c0_28 = arith.constant 0 : index
    %28 = vector.load %arg6[%c1_26, %c0_27, %c0_28] : memref<2x20x256xf32, #tpu.memory_space<vmem>>, vector<1x20x256xf32>
    %29 = vector.shape_cast %28 : vector<1x20x256xf32> to vector<20x256xf32>
    %30 = vector.shape_cast %27 : vector<20x256xf32> to vector<1x20x256xf32>
    tpu.vector_store %arg6[%c1_26, %c0_27, %c0_28], %30 {strides = array<i32>} : memref<2x20x256xf32, #tpu.memory_space<vmem>>, vector<1x20x256xf32>,
    %c1_29 = arith.constant 1 : index
    %c0_30 = arith.constant 0 : index
    %c0_31 = arith.constant 0 : index
    %31 = vector.load %arg2[%c1_29, %c0_30, %c0_31] : memref<2x4x256xf32, #tpu.memory_space<vmem>>, vector<1x4x256xf32>
    %32 = vector.shape_cast %31 : vector<1x4x256xf32> to vector<4x256xf32>
    %33 = vector.extract_strided_slice %23 {offsets = [16, 0], sizes = [16, 256], strides = [1, 1]} : vector<32x256xf32> to vector<16x256xf32>
    %34 = tpu.concatenate %32, %33 in 0 : vector<4x256xf32>, vector<16x256xf32> -> vector<20x256xf32>
    %c1_32 = arith.constant 1 : index
    %c0_33 = arith.constant 0 : index
    %c0_34 = arith.constant 0 : index
    %35 = vector.load %arg7[%c1_32, %c0_33, %c0_34] : memref<2x20x256xf32, #tpu.memory_space<vmem>>, vector<1x20x256xf32>
    %36 = vector.shape_cast %35 : vector<1x20x256xf32> to vector<20x256xf32>
    %37 = vector.shape_cast %34 : vector<20x256xf32> to vector<1x20x256xf32>
    tpu.vector_store %arg7[%c1_32, %c0_33, %c0_34], %37 {strides = array<i32>} : memref<2x20x256xf32, #tpu.memory_space<vmem>>, vector<1x20x256xf32>,
    return
  }
  func.func @transform_0(%arg0: i32) -> (i32, i32, i32) {
    %c0_i32 = arith.constant 0 : i32
    %c0_i32_0 = arith.constant 0 : i32
    %c0_i32_1 = arith.constant 0 : i32
    return %arg0, %c0_i32, %c0_i32_0 : i32, i32, i32
  }
  func.func @transform_1(%arg0: i32) -> (i32, i32, i32) {
    %c0_i32 = arith.constant 0 : i32
    %c0_i32_0 = arith.constant 0 : i32
    %c0_i32_1 = arith.constant 0 : i32
    return %arg0, %c0_i32, %c0_i32_0 : i32, i32, i32
  }
  func.func @transform_2(%arg0: i32) -> (i32, i32, i32) {
    %c0_i32 = arith.constant 0 : i32
    %c0_i32_0 = arith.constant 0 : i32
    %c0_i32_1 = arith.constant 0 : i32
    return %arg0, %c0_i32, %c0_i32_0 : i32, i32, i32
  }
  func.func @transform_3(%arg0: i32) -> (i32, i32) {
    %c0_i32 = arith.constant 0 : i32
    %c0_i32_0 = arith.constant 0 : i32
    %c0_i32_1 = arith.constant 0 : i32
    return %c0_i32, %c0_i32_0 : i32, i32
  }
  func.func @transform_4(%arg0: i32) -> (i32, i32) {
    %c0_i32 = arith.constant 0 : i32
    %c0_i32_0 = arith.constant 0 : i32
    %c0_i32_1 = arith.constant 0 : i32
    return %c0_i32, %c0_i32_0 : i32, i32
  }
  func.func @transform_5(%arg0: i32) -> (i32, i32, i32) {
    %c0_i32 = arith.constant 0 : i32
    %c0_i32_0 = arith.constant 0 : i32
    %c0_i32_1 = arith.constant 0 : i32
    return %arg0, %c0_i32, %c0_i32_0 : i32, i32, i32
  }
  func.func @transform_6(%arg0: i32) -> (i32, i32, i32) {
    %c0_i32 = arith.constant 0 : i32
    %c0_i32_0 = arith.constant 0 : i32
    %c0_i32_1 = arith.constant 0 : i32
    return %arg0, %c0_i32, %c0_i32_0 : i32, i32, i32
  }
}

</mosaic_0001>

<bundles_post_ra>
// kernel: tpu_custom_call.1
= control target key start
LH: loop header
LB: loop body
LE: loop exit
PB: predicated region body
PF: predicated region fallthrough
CT: control target
= control target key end

     0   :  { %12 = vsyncpa [#allocation3], 0  ;;  %s1094_s0 = inlined_call_operand.hbm [shape: f32[2,4,256], index: 0, kind: input, shape index: {}]   ;;  %s1095_s1 = inlined_call_operand.hbm [shape: f32[2,4,256], index: 1, kind: input, shape index: {}]   ;;  %s1096_s2 = inlined_call_operand.hbm [shape: f32[2,16,56], index: 2, kind: input, shape index: {}]   ;;  %s1097_s3 = inlined_call_operand.hbm [shape: f32[32,56], index: 3, kind: input, shape index: {}]   ;;  %s1098_s4 = inlined_call_operand.hbm [shape: f32[16,256], index: 4, kind: input, shape index: {}]   ;;  %s1099_s5 = inlined_call_operand.vmem [shape: f32[2,20,256], index: 5, kind: output, shape index: {0}]   ;;  %s1100_s6 = inlined_call_operand.vmem [shape: f32[2,20,256], index: 6, kind: output, shape index: {1}]  }
   0x1   :  { %13 = vsyncpa [#allocation5], 0 }
   0x2   :  { %14 = vsyncpa [#allocation8], 0  ;;  %s845_s21 = smov [#allocation4]   ;;  %s846_s23 = smov [#allocation7]  }
   0x3   :  { %s32_s22 = sshll.u32 %s845_s21, 4  ;;  %s56_s24 = sshll.u32 %s846_s23, 4  ;;  %s33_s22 = int_to_ptr.vmem [resolvable:$true] %s32_s22  ;;  %s890_s24 = int_to_ptr.vmem [resolvable:$true] %s56_s24 }
   0x4   :  { %s729_s27 = scalar_lea.hbm %s1095_s1, 256 }
   0x5   :  { %p730_p0 = scmp.ne.s32.totalorder %s1095_s1, %s729_s27  ;;  %p733_p1 = scmp.lt.u32.totalorder %s729_s27, %s1095_s1 }
   0x7   :  { %p735_p2 = pnand %p733_p1, %p730_p0 }
   0x9   :  { %738 = shalt.err (!%p735_p2)
}
   0xa   :  { %s739_s8 = scalar_lea.vmem %s33_s22, 256  ;;  %p744_p4 = scmp.lt.s32.totalorder %s33_s22, %s33_s22 }
   0xb   :  { %p740_p3 = scmp.ne.s32.totalorder %s33_s22, %s739_s8  ;;  %p745_p5 = scmp.lt.s32.totalorder %s739_s8, %s739_s8 }
   0xd   :  { %p746_p6 = por %p745_p5, %p744_p4 }
   0xf   :  { %p747_p7 = pnand %p746_p6, %p740_p3 }
  0x11   :  { %750 = shalt.err (!%p747_p7)
}
  0x12   :  { %s847_s9 = smov 128   ;;  %s848_s10 = smov 8  }
  0x13   :  { %38 = dma.hbm_to_vmem [thread:$0]  %s1095_s1, 256, %s33_s22, [#allocation5], %s847_s9, %s847_s9, %s848_s10  }
  0x14   :  { %s751_s15 = scalar_lea.hbm %s1097_s3, 512 }
  0x15   :  { %p752_p8 = scmp.ne.s32.totalorder %s1097_s3, %s751_s15  ;;  %p755_p9 = scmp.lt.u32.totalorder %s751_s15, %s1097_s3 }
  0x17   :  { %p757_p10 = pnand %p755_p9, %p752_p8 }
  0x19   :  { %760 = shalt.err (!%p757_p10)
}
  0x1a   :  { %s761_s20 = scalar_lea.vmem %s890_s24, 512  ;;  %p766_p12 = scmp.lt.s32.totalorder %s890_s24, %s890_s24 }
  0x1b   :  { %p762_p11 = scmp.ne.s32.totalorder %s890_s24, %s761_s20  ;;  %p767_p13 = scmp.lt.s32.totalorder %s761_s20, %s761_s20 }
  0x1d   :  { %p768_p0 = por %p767_p13, %p766_p12 }
  0x1f   :  { %p769_p1 = pnand %p768_p0, %p762_p11 }
  0x21   :  { %772 = shalt.err (!%p769_p1)
}
  0x22   :  { %62 = dma.hbm_to_vmem [thread:$0]  %s1097_s3, 512, %s890_s24, [#allocation8], %s847_s9, %s847_s9, %s848_s10  }
  0x23   :  { %s849_s22 = smov [#allocation2]   ;;  %s850_s25 = smov [#allocation6]  }
  0x24   :  { %s20_s23 = sshll.u32 %s849_s22, 4  ;;  %s44_s26 = sshll.u32 %s850_s25, 4  ;;  %s21_s23 = int_to_ptr.vmem [resolvable:$true] %s20_s23  ;;  %s927_s26 = int_to_ptr.vmem [resolvable:$true] %s44_s26 }
  0x25   :  { %s773_s29 = scalar_lea.hbm %s1094_s0, 256 }
  0x26   :  { %p774_p2 = scmp.ne.s32.totalorder %s1094_s0, %s773_s29  ;;  %p777_p3 = scmp.lt.u32.totalorder %s773_s29, %s1094_s0 }
  0x28   :  { %p779_p4 = pnand %p777_p3, %p774_p2 }
  0x2a   :  { %782 = shalt.err (!%p779_p4)
}
  0x2b   :  { %s783_s3 = scalar_lea.vmem %s21_s23, 256  ;;  %p788_p6 = scmp.lt.s32.totalorder %s21_s23, %s21_s23 }
  0x2c   :  { %p784_p5 = scmp.ne.s32.totalorder %s21_s23, %s783_s3  ;;  %p789_p7 = scmp.lt.s32.totalorder %s783_s3, %s783_s3 }
  0x2e   :  { %p790_p8 = por %p789_p7, %p788_p6 }
  0x30   :  { %p791_p9 = pnand %p790_p8, %p784_p5 }
  0x32   :  { %794 = shalt.err (!%p791_p9)
}
  0x33   :  { %26 = dma.hbm_to_vmem [thread:$0]  %s1094_s0, 256, %s21_s23, [#allocation3], %s847_s9, %s847_s9, %s848_s10  }
  0x34   :  { %s795_s15 = scalar_lea.hbm %s1096_s2, 512 }
  0x35   :  { %p796_p10 = scmp.ne.s32.totalorder %s1096_s2, %s795_s15  ;;  %p799_p11 = scmp.lt.u32.totalorder %s795_s15, %s1096_s2 }
  0x37   :  { %p801_p12 = pnand %p799_p11, %p796_p10 }
  0x39   :  { %804 = shalt.err (!%p801_p12)
}
  0x3a   :  { %s805_s20 = scalar_lea.vmem %s927_s26, 512  ;;  %p810_p0 = scmp.lt.s32.totalorder %s927_s26, %s927_s26 }
  0x3b   :  { %p806_p13 = scmp.ne.s32.totalorder %s927_s26, %s805_s20  ;;  %p811_p1 = scmp.lt.s32.totalorder %s805_s20, %s805_s20 }
  0x3d   :  { %p812_p2 = por %p811_p1, %p810_p0 }
  0x3f   :  { %p813_p3 = pnand %p812_p2, %p806_p13 }
  0x41   :  { %816 = shalt.err (!%p813_p3)
}
  0x42   :  { %50 = dma.hbm_to_vmem [thread:$0]  %s1096_s2, 512, %s927_s26, [#allocation5], %s847_s9, %s847_s9, %s848_s10  }
  0x43   :  { %s851_s21 = smov [#allocation9]   ;;  %s817_s27 = scalar_lea.hbm %s1098_s4, 512 }
  0x44   :  { %s68_s22 = sshll.u32 %s851_s21, 4  ;;  %p818_p4 = scmp.ne.s32.totalorder %s1098_s4, %s817_s27  ;;  %s69_s22 = int_to_ptr.vmem [resolvable:$true] %s68_s22 }
  0x45   :  { %p821_p5 = scmp.lt.u32.totalorder %s817_s27, %s1098_s4 }
  0x47   :  { %p823_p6 = pnand %p821_p5, %p818_p4 }
  0x49   :  { %826 = shalt.err (!%p823_p6)
}
  0x4a   :  { %s827_s8 = scalar_lea.vmem %s69_s22, 512  ;;  %p832_p8 = scmp.lt.s32.totalorder %s69_s22, %s69_s22 }
  0x4b   :  { %p828_p7 = scmp.ne.s32.totalorder %s69_s22, %s827_s8  ;;  %p833_p9 = scmp.lt.s32.totalorder %s827_s8, %s827_s8 }
  0x4d   :  { %p834_p10 = por %p833_p9, %p832_p8 }
  0x4f   :  { %p835_p11 = pnand %p834_p10, %p828_p7 }
  0x51   :  { %838 = shalt.err (!%p835_p11)
}
  0x52   :  { %s852_s2 = smov 256   ;;  %s853_s9 = smov 16  }
  0x53   :  { %74 = dma.hbm_to_vmem [thread:$0]  %s1098_s4, 512, %s69_s22, [#allocation8], %s852_s2, %s852_s2, %s853_s9  }
  0x54   :  { %839 = dma.done.wait [#allocation3], 256  }
  0x55   :  { %840 = vsyncadd [#allocation3], 4294967040 }
  0x56   :  { %841 = dma.done.wait [#allocation5], 768  }
  0x57   :  { %842 = vsyncadd [#allocation5], 4294966528 }
  0x58   :  { %843 = dma.done.wait [#allocation8], 1024  }
  0x59   :  { %844 = vsyncadd [#allocation8], 4294966272  ;;  %vm100_vm0 = vcmask 457728   ;;  %v98_v1 = vld [vmem:[#allocation6] sm:$0xff]  ;;  %v99_v2 = vld [vmem:[#allocation6 + $0x8] sm:$0xff]  ;;  %v854_v17 = vmov 0.0  }
  0x5a   :  { %vm978_vm1 = vmpackc.low %vm100_vm0, %vm100_vm0  ;;  %v90_v3 = vld [vmem:[#allocation7] sm:$0xff]  ;;  %v693_v4 = vpack.c.bf16 %v99_v2, %v98_v1  ;;  %v364_v5 = vld [vmem:[#allocation6 + $0x10] sm:$0xff]  ;;  %281 = vmatprep.mubr.f32.mxu1 %v854_v17  ;;  %vm204_vm2 = vcmask 130048   ;;  %vm314_vm3 = vcmask 1043456  }
  0x5b   :  { %677 = vmatprep.mubr.msk.f32.mxu0 %vm100_vm0, %v90_v3  ;;  %v365_v6 = vld [vmem:[#allocation6 + $0x18] sm:$0xff]  ;;  %v95_v7 = vld [vmem:[#allocation9 + $0x8] sm:$0xff]  ;;  %v94_v10 = vld [vmem:[#allocation9] sm:$0xff] }
  0x5c   :  { %695 = vmatprep.subr.msk.bf16.mxu0 %vm978_vm1, %v693_v4  ;;  %v703_v8 = vpack.c.bf16 %v365_v6, %v364_v5  ;;  %v97_v9 = vld [vmem:[#allocation9 + $0x18] sm:$0xff]  ;;  %v96_v11 = vld [vmem:[#allocation9 + $0x10] sm:$0xff]  ;;  %v91_v14 = vld [vmem:[#allocation7 + $0x8] sm:$0xff] }
  0x5d   :  { %698 = vmatpush3.bf16.xpose.msk.msra.mxu0 %vm978_vm1, %v693_v4  ;;  %v699_v12 = vpack.c.bf16 %v97_v9, %v95_v7  ;;  %v701_v13 = vpack.c.bf16 %v96_v11, %v94_v10  ;;  %v92_v15 = vld [vmem:[#allocation7 + $0x10] sm:$0xff]  ;;  %v93_v16 = vld [vmem:[#allocation7 + $0x18] sm:$0xff]  ;;  %v306_v26 = vld [vmem:[#allocation2] sm:$0xff] }
  0x5e   :  { %705 = vmatprep.subr.msk.bf16.mxu0 %vm978_vm1, %v703_v8  ;;  %v308_v28 = vcombine.high %v306_v26, %v306_v26  ;;  %v335_v37 = vld [vmem:[#allocation4] sm:$0xff]  ;;  %v559_v38 = vld [vmem:[#allocation2 + $0x8] sm:$0xff]  ;;  %v589_v1 = vld [vmem:[#allocation4 + $0x8] sm:$0xff] }
  0x5f   :  { %700 = vmatprep.subr.bf16.mxu1 %v699_v12  ;;  %v337_v43 = vcombine.high %v335_v37, %v335_v37  ;;  %v561_v45 = vcombine.high %v559_v38, %v559_v38  ;;  %v591_v6 = vcombine.high %v589_v1, %v589_v1 }
  0x60   :  { %702 = vmatpush1.bf16.msra.mxu1 %v701_v13 }
  0x61   :  { %713 = vmatprep.subr.bf16.mxu1 %v699_v12 }
  0x64   :  { %678 = vmatmul.mubr.msk.f32.vlgmr.msra.gmra.mrb[0].mxu0 %vm100_vm0, %v91_v14 }
  0x65   :  { %680 = vmatprep.mubr.msk.f32.mxu0 %vm100_vm0, %v92_v15  ;;  %708 = vmatpush3.bf16.xpose.msk.msra.mxu0 %vm978_vm1, %v703_v8 }
  0x66   :  { %710 = vmatprep.subr.bf16.mxu0 %v699_v12 }
  0x68   :  { %681 = vmatmul.mubr.msk.f32.gmra.mrb[2].mxu0 %vm100_vm0, %v93_v16 }
  0x69   :  { %687 = vmatprep.mubr.msk.f32.mxu0 %vm100_vm0, %v90_v3 }
  0x6c   :  { %688 = vmatmul.mubr.msk.f32.vlgmr.msra.gmra.mrb[4].mxu0 %vm100_vm0, %v91_v14 }
  0x6d   :  { %690 = vmatprep.mubr.msk.f32.mxu0 %vm100_vm0, %v92_v15  ;;  %712 = vmatpush1.bf16.msra.mxu0 %v701_v13 }
  0x70   :  { %691 = vmatmul.mubr.msk.f32.gmra.mrb[6].mxu0 %vm100_vm0, %v93_v16 }
  0x71   :  { %533 = vmatprep.mubr.f32.mxu0 %v854_v17 }
 0x137   :  { %v679_v18 = vpop.f32.mrb[0].mxu0 }
 0x138   :  { %v185_v19 = vpop.f32.mrb[1].mxu0 }
 0x139   :  { %635 = vmatmul.mubr.msk.f32.vlgmr.msra.gmra.mrb[0].mxu1 %vm204_vm2, %v185_v19 }
 0x13a   :  { %714 = vmatpush1.bf16.msra.mxu1 %v701_v13  ;;  %287 = vmatprep.mubr.f32.mxu1 %v854_v17 }
 0x13b   :  { %v682_v20 = vpop.f32.mrb[2].mxu0 }
 0x13c   :  { %v195_v21 = vpop.f32.mrb[3].mxu0 }
 0x13d   :  { %636 = vmatmul.mubr.msk.f32.gmra.mrb[2].mxu1 %vm204_vm2, %v679_v18 }
 0x13e   :  { %293 = vmatprep.mubr.f32.mxu1 %v854_v17 }
 0x13f   :  { %v689_v22 = vpop.f32.mrb[4].mxu0 }
 0x140   :  { %v438_v23 = vpop.f32.mrb[5].mxu0 }
 0x141   :  { %637 = vmatmul.mubr.msk.f32.gmra.mrb[4].mxu1 %vm204_vm2, %v195_v21  ;;  %645 = vmatmul.mubr.msk.f32.vlgmr.msra.gmra.mrb[8].mxu0 %vm204_vm2, %v438_v23 }
 0x142   :  { %299 = vmatprep.mubr.f32.mxu1 %v854_v17 }
 0x143   :  { %v692_v24 = vpop.f32.mrb[6].mxu0 }
 0x144   :  { %v448_v25 = vpop.f32.mrb[7].mxu0 }
 0x145   :  { %638 = vmatmul.mubr.msk.f32.gmra.mrb[6].mxu1 %vm204_vm2, %v682_v20 }
 0x146   :  { %539 = vmatprep.mubr.f32.mxu1 %v854_v17 }
 0x149   :  { %646 = vmatmul.mubr.msk.f32.vlgmr.msra.gmra.mrb[8].mxu1 %vm204_vm2, %v689_v22 }
 0x14a   :  { %545 = vmatprep.mubr.f32.mxu1 %v854_v17 }
 0x14d   :  { %647 = vmatmul.mubr.msk.f32.gmra.mrb[10].mxu1 %vm204_vm2, %v448_v25 }
 0x14e   :  { %551 = vmatprep.mubr.f32.mxu1 %v854_v17 }
 0x151   :  { %648 = vmatmul.mubr.msk.f32.gmra.mrb[12].mxu1 %vm204_vm2, %v692_v24 }
 0x20c   :  { %v283_v27 = vpop.f32.mrb[0].mxu1 }
 0x20d   :  { %v315_v29 = vrot.slane %v283_v27, 4  ;;  %v285_v30 = vpop.f32.mrb[1].mxu1 }
 0x20e   :  { %v316_v31 = vrot.slane %v285_v30, 4 }
 0x20f   :  { %v327_v32 = vsel %vm314_vm3, %v306_v26, %v315_v29 }
 0x210   :  { %329 = vst [vmem:[%s1099_s5] sm:$0xff] %v327_v32  ;;  %v328_v33 = vsel %vm314_vm3, %v308_v28, %v316_v31  ;;  %v289_v34 = vpop.f32.mrb[2].mxu1 }
 0x211   :  { %330 = vst [vmem:[%s1099_s5 + $0x8] sm:$0xff] %v328_v33  ;;  %v317_v35 = vrot.slane %v289_v34, 4  ;;  %v291_v36 = vpop.f32.mrb[3].mxu1 }
 0x212   :  { %v319_v39 = vrot.slane %v291_v36, 4 }
 0x213   :  { %v318_v40 = vsel %vm314_vm3, %v315_v29, %v317_v35  ;;  %333 = vst [vmem:[%s1099_s5 + $0x20] sm:$0xf] %v317_v35 }
 0x214   :  { %331 = vst [vmem:[%s1099_s5 + $0x10] sm:$0xff] %v318_v40  ;;  %v320_v41 = vsel %vm314_vm3, %v316_v31, %v319_v39  ;;  %334 = vst [vmem:[%s1099_s5 + $0x28] sm:$0xf] %v319_v39  ;;  %v295_v42 = vpop.f32.mrb[4].mxu1  ;;  %v535_v44 = vpop.f32.mrb[8].mxu0 }
 0x215   :  { %332 = vst [vmem:[%s1099_s5 + $0x18] sm:$0xff] %v320_v41  ;;  %v343_v46 = vrot.slane %v295_v42, 4  ;;  %v297_v47 = vpop.f32.mrb[5].mxu1  ;;  %v567_v48 = vrot.slane %v535_v44, 4  ;;  %v537_v49 = vpop.f32.mrb[9].mxu0 }
 0x216   :  { %v344_v50 = vrot.slane %v297_v47, 4  ;;  %v568_v51 = vrot.slane %v537_v49, 4 }
 0x217   :  { %v355_v52 = vsel %vm314_vm3, %v335_v37, %v343_v46  ;;  %v579_v53 = vsel %vm314_vm3, %v559_v38, %v567_v48 }
 0x218   :  { %357 = vst [vmem:[%s1100_s6] sm:$0xff] %v355_v52  ;;  %v356_v54 = vsel %vm314_vm3, %v337_v43, %v344_v50  ;;  %v301_v55 = vpop.f32.mrb[6].mxu1  ;;  %649 = vst [vmem:[%s1099_s5 + $0x30] sm:$0xff] %v579_v53  ;;  %v580_v56 = vsel %vm314_vm3, %v561_v45, %v568_v51 }
 0x219   :  { %358 = vst [vmem:[%s1100_s6 + $0x8] sm:$0xff] %v356_v54  ;;  %v345_v57 = vrot.slane %v301_v55, 4  ;;  %v303_v58 = vpop.f32.mrb[7].mxu1  ;;  %650 = vst [vmem:[%s1099_s5 + $0x38] sm:$0xff] %v580_v56 }
 0x21a   :  { %v347_v59 = vrot.slane %v303_v58, 4 }
 0x21b   :  { %v346_v60 = vsel %vm314_vm3, %v343_v46, %v345_v57  ;;  %361 = vst [vmem:[%s1100_s6 + $0x20] sm:$0xf] %v345_v57 }
 0x21c   :  { %359 = vst [vmem:[%s1100_s6 + $0x10] sm:$0xff] %v346_v60  ;;  %v348_v61 = vsel %vm314_vm3, %v344_v50, %v347_v59  ;;  %362 = vst [vmem:[%s1100_s6 + $0x28] sm:$0xf] %v347_v59  ;;  %v541_v62 = vpop.f32.mrb[8].mxu1 }
 0x21d   :  { %360 = vst [vmem:[%s1100_s6 + $0x18] sm:$0xff] %v348_v61  ;;  %v569_v63 = vrot.slane %v541_v62, 4  ;;  %v543_v0 = vpop.f32.mrb[9].mxu1 }
 0x21e   :  { %v571_v2 = vrot.slane %v543_v0, 4 }
 0x21f   :  { %v570_v3 = vsel %vm314_vm3, %v567_v48, %v569_v63  ;;  %653 = vst [vmem:[%s1099_s5 + $0x50] sm:$0xf] %v569_v63 }
 0x220   :  { %651 = vst [vmem:[%s1099_s5 + $0x40] sm:$0xff] %v570_v3  ;;  %v572_v4 = vsel %vm314_vm3, %v568_v51, %v571_v2  ;;  %654 = vst [vmem:[%s1099_s5 + $0x58] sm:$0xf] %v571_v2  ;;  %v547_v5 = vpop.f32.mrb[10].mxu1 }
 0x221   :  { %652 = vst [vmem:[%s1099_s5 + $0x48] sm:$0xff] %v572_v4  ;;  %v597_v7 = vrot.slane %v547_v5, 4  ;;  %v549_v8 = vpop.f32.mrb[11].mxu1 }
 0x222   :  { %v598_v9 = vrot.slane %v549_v8, 4 }
 0x223   :  { %v609_v10 = vsel %vm314_vm3, %v589_v1, %v597_v7 }
 0x224   :  { %655 = vst [vmem:[%s1100_s6 + $0x30] sm:$0xff] %v609_v10  ;;  %v610_v11 = vsel %vm314_vm3, %v591_v6, %v598_v9  ;;  %v553_v12 = vpop.f32.mrb[12].mxu1 }
 0x225   :  { %656 = vst [vmem:[%s1100_s6 + $0x38] sm:$0xff] %v610_v11  ;;  %v599_v13 = vrot.slane %v553_v12, 4  ;;  %v555_v14 = vpop.f32.mrb[13].mxu1 }
 0x226   :  { %v601_v15 = vrot.slane %v555_v14, 4 }
 0x227   :  { %v600_v16 = vsel %vm314_vm3, %v597_v7, %v599_v13  ;;  %659 = vst [vmem:[%s1100_s6 + $0x50] sm:$0xf] %v599_v13 }
 0x228   :  { %657 = vst [vmem:[%s1100_s6 + $0x40] sm:$0xff] %v600_v16  ;;  %v602_v17 = vsel %vm314_vm3, %v598_v9, %v601_v15  ;;  %660 = vst [vmem:[%s1100_s6 + $0x58] sm:$0xf] %v601_v15 }
 0x229   :  { %658 = vst [vmem:[%s1100_s6 + $0x48] sm:$0xff] %v602_v17 }
 0x22a   :  { %626 = vsyncpa [#allocation3], 1 }
 0x22b   :  { %627 = vsyncpa [#allocation5], 1 }
 0x22c   :  { %628 = vsyncpa [#allocation8], 1 }

</bundles_post_ra>
